<compile_context>
chip_gen: v6e
topology: v6e:2x2x1
jax: 0.10.0
libtpu: 0.0.40
codegen_flags: <defaults>
</compile_context>

<pallas_src>
import jax
import jax.numpy as jnp
from jax.experimental import pallas as pl
from jax.experimental.pallas import tpu as pltpu

EPS = 1e-5  # PyTorch nn.LayerNorm default eps


def _round_up(x, m):
    return (x + m - 1) // m * m


def _vmem_capacity_bytes():
    try:
        return int(pltpu.get_tpu_info().vmem_capacity_bytes)
    except Exception:
        return 64 * 1024 * 1024  # conservative fallback (v7x per-TC VMEM)


def prenorm_kernel(x_ref, gamma_ref, beta_ref, w_ref, b_ref, o_ref, y_ref):
    # grid = (row tiles, output-column tiles). x / gamma / beta blocks are
    # constant along the column axis, so LayerNorm is computed once per row
    # tile, cast to the matmul dtype, and cached in the y scratch.
    @pl.when(pl.program_id(1) == 0)
    def _():
        x = x_ref[...].astype(jnp.float32)
        # fused single pass: mean and E[x^2] reductions are independent
        mean = jnp.mean(x, axis=-1, keepdims=True)
        msq = jnp.mean(x * x, axis=-1, keepdims=True)
        var = msq - mean * mean                       # biased var, like torch LN
        inv = jax.lax.rsqrt(var + EPS)
        y = (x - mean) * inv * gamma_ref[...] + beta_ref[...]
        y_ref[...] = y.astype(y_ref.dtype)

    # fn: Linear(dim -> dim). bf16 x bf16 -> f32 accumulation on the MXU.
    out = jnp.dot(y_ref[...], w_ref[...], preferred_element_type=jnp.float32)
    out = out + b_ref[...].astype(jnp.float32)
    o_ref[...] = out.astype(o_ref.dtype)


def prenorm_linear(x, gamma, beta, w, b, *, row_tile=None,
                   matmul_dtype=jnp.bfloat16):
    """x: (B, S, D) -> (B, S, D). Computes Linear(LayerNorm(x))."""
    B, S, D = x.shape
    R = B * S

    x_item = jnp.dtype(x.dtype).itemsize
    mm_item = jnp.dtype(matmul_dtype).itemsize

    # ---- tile selection (dtype-aware sublane minimum, big tiles preferred) --
    min_rows = 16 if x_item == 2 else (32 if x_item == 1 else 8)
    if row_tile is None:
        # Big tiles amortize the ~0.35us/grid-step overhead and fill the MXU;
        # measured BlockSpec scaling flattens past ~512 rows.
        row_tile = min(512, max(min_rows, _round_up(R, min_rows)))
    row_tile = max(min_rows, _round_up(row_tile, min_rows))

    n_pad0 = _round_up(D, 128)           # lane-dense output columns
    col_tile = min(n_pad0, 2048)

    def vmem_estimate(rt, ct):
        return (2 * rt * D * x_item            # x tile, double buffered
                + 2 * rt * ct * x_item         # out tile, double buffered
                + 2 * D * ct * mm_item         # W tile, double buffered
                + rt * D * mm_item             # y scratch (bf16)
                + 4 * D * 4 + 2 * ct * 4)      # gamma / beta / bias

    cap = _vmem_capacity_bytes()
    budget = int(0.70 * cap)
    while vmem_estimate(row_tile, col_tile) > budget and col_tile > 128:
        nxt = _round_up(col_tile // 2, 128)
        if nxt >= col_tile:
            break
        col_tile = nxt
    while vmem_estimate(row_tile, col_tile) > budget and row_tile > min_rows:
        row_tile = max(min_rows, _round_up(row_tile // 2, min_rows))

    R_pad = _round_up(R, row_tile)
    N_pad = _round_up(n_pad0, col_tile)

    # ---- operand prep: pad rows, pad/cast W & bias, LN params in f32 --------
    x2 = x.reshape(R, D)
    if R_pad != R:
        x2 = jnp.pad(x2, ((0, R_pad - R), (0, 0)))
    gamma2 = gamma.reshape(1, D).astype(jnp.float32)
    beta2 = beta.reshape(1, D).astype(jnp.float32)
    w2 = w.astype(matmul_dtype)
    b2 = b.reshape(1, D).astype(jnp.float32)
    if N_pad != D:
        w2 = jnp.pad(w2, ((0, 0), (0, N_pad - D)))
        b2 = jnp.pad(b2, ((0, 0), (0, N_pad - D)))

    grid = (R_pad // row_tile, N_pad // col_tile)
    vmem_limit = int(vmem_estimate(row_tile, col_tile) * 1.5) + (8 << 20)
    vmem_limit = max(32 << 20, min(vmem_limit, int(0.95 * cap)))

    out2 = pl.pallas_call(
        prenorm_kernel,
        out_shape=jax.ShapeDtypeStruct((R_pad, N_pad), x.dtype),
        grid_spec=pltpu.PrefetchScalarGridSpec(
            num_scalar_prefetch=0,
            grid=grid,
            in_specs=[
                pl.BlockSpec((row_tile, D), lambda i, j: (i, 0)),   # x rows
                pl.BlockSpec((1, D), lambda i, j: (0, 0)),          # gamma
                pl.BlockSpec((1, D), lambda i, j: (0, 0)),          # beta
                pl.BlockSpec((D, col_tile), lambda i, j: (0, j)),   # W cols
                pl.BlockSpec((1, col_tile), lambda i, j: (0, j)),   # bias
            ],
            out_specs=pl.BlockSpec((row_tile, col_tile), lambda i, j: (i, j)),
            scratch_shapes=[pltpu.VMEM((row_tile, D), matmul_dtype)],
        ),
        compiler_params=pltpu.CompilerParams(
            # Row axis shards across TensorCores (megacore); the column axis
            # carries the y scratch, so it must remain "arbitrary".
            dimension_semantics=("parallel", "arbitrary"),
            vmem_limit_bytes=vmem_limit,
        ),
    )(x2, gamma2, beta2, w2, b2)

    return out2[:R, :D].reshape(B, S, D)


# ---------------------------- references -------------------------------------
def prenorm_reference_f32(x, gamma, beta, w, b):
    """Exact PyTorch-equivalent math, all float32."""
    xf = x.astype(jnp.float32)
    mean = jnp.mean(xf, axis=-1, keepdims=True)
    xc = xf - mean
    var = jnp.mean(xc * xc, axis=-1, keepdims=True)
    y = xc * jax.lax.rsqrt(var + EPS) * gamma.reshape(1, 1, -1) \
        + beta.reshape(1, 1, -1)
    out = jnp.dot(y, w, preferred_element_type=jnp.float32) + b.reshape(1, 1, -1)
    return out.astype(x.dtype)


def prenorm_reference_matched(x, gamma, beta, w, b, matmul_dtype):
    """Same formulas / matmul precision as the kernel (tight check)."""
    xf = x.astype(jnp.float32)
    mean = jnp.mean(xf, axis=-1, keepdims=True)
    msq = jnp.mean(xf * xf, axis=-1, keepdims=True)
    inv = jax.lax.rsqrt(msq - mean * mean + EPS)
    y = (xf - mean) * inv * gamma.reshape(1, 1, -1) + beta.reshape(1, 1, -1)
    y = y.astype(matmul_dtype)
    out = jnp.dot(y, w.astype(matmul_dtype),
                  preferred_element_type=jnp.float32) + b.reshape(1, 1, -1)
    return out.astype(x.dtype)


if __name__ == "__main__":
    # TODO(synk): PreNorm wraps an arbitrary `fn`; it is instantiated here as a
    # deterministic Linear(dim, dim). Other fns (MHSA/FFN) need their own kernels.
    B, S, D = 2, 8, 32

    key = jax.random.PRNGKey(0)
    kx, kw, kb = jax.random.split(key, 3)

    x = jax.random.normal(kx, (B, S, D), dtype=jnp.float32)

    # nn.LayerNorm(dim) params: gamma = ones, beta = zeros (PyTorch default init)
    gamma = jnp.ones((D,), dtype=jnp.float32)
    beta = jnp.zeros((D,), dtype=jnp.float32)

    # Deterministic params for the wrapped fn = Linear(dim, dim)
    w = jax.random.normal(kw, (D, D), dtype=jnp.float32) * (1.0 / jnp.sqrt(D))
    b = jax.random.normal(kb, (D,), dtype=jnp.float32) * 0.01

    out = prenorm_linear(x, gamma, beta, w, b)
    out = jax.block_until_ready(out)
    assert out.shape == (B, S, D)

    # Tight check vs a reference using the same matmul precision (bf16 operands,
    # f32 accumulation on the MXU).
    ref_matched = prenorm_reference_matched(x, gamma, beta, w, b, jnp.bfloat16)
    assert jnp.allclose(out, ref_matched, atol=2e-3, rtol=2e-3), \
        "mismatch vs matched-precision reference"

    # Looser check vs the full-f32 PyTorch-equivalent reference (bf16 MXU
    # operands introduce ~1e-3-scale differences).
    ref_f32 = prenorm_reference_f32(x, gamma, beta, w, b)
    assert jnp.allclose(out, ref_f32, atol=5e-2, rtol=5e-2), \
        "mismatch vs f32 reference"

    print("KERNEL_OK")
</pallas_src>

<mosaic_0001>
module attributes {stable_mosaic.version = 11 : i64} {
  func.func @prenorm_kernel(%arg0: i32, %arg1: i32, %arg2: memref<16x32xf32, #tpu.memory_space<vmem>>, %arg3: memref<1x32xf32, #tpu.memory_space<vmem>>, %arg4: memref<1x32xf32, #tpu.memory_space<vmem>>, %arg5: memref<32x128xbf16, #tpu.memory_space<vmem>>, %arg6: memref<1x128xf32, #tpu.memory_space<vmem>>, %arg7: memref<16x128xf32, #tpu.memory_space<vmem>>, %arg8: memref<16x32xbf16, #tpu.memory_space<vmem>>) attributes {dimension_semantics = [#tpu.dimension_semantics<parallel>, #tpu.dimension_semantics<arbitrary>], iteration_bounds = array<i64: 1, 1>, scalar_prefetch = 0 : i64, scratch_operands = 1 : i64, tpu.core_type = #tpu.core_type<tc>, window_params = [{transform_indices = @transform_0, window_bounds = array<i64: 16, 32>}, {pipeline_mode = #tpu.pipeline_mode<synchronous>, transform_indices = @transform_1, window_bounds = array<i64: 1, 32>}, {pipeline_mode = #tpu.pipeline_mode<synchronous>, transform_indices = @transform_2, window_bounds = array<i64: 1, 32>}, {transform_indices = @transform_3, window_bounds = array<i64: 32, 128>}, {transform_indices = @transform_4, window_bounds = array<i64: 1, 128>}, {transform_indices = @transform_5, window_bounds = array<i64: 16, 128>}]} {
    %c0_i32 = arith.constant 0 : i32
    %0 = arith.cmpi eq, %arg1, %c0_i32 : i32
    %1 = arith.extui %0 : i1 to i32
    %c0_i32_0 = arith.constant 0 : i32
    %2 = arith.cmpi ne, %1, %c0_i32_0 : i32
    scf.if %2 {
      %c0_8 = arith.constant 0 : index
      %c0_9 = arith.constant 0 : index
      %10 = vector.load %arg2[%c0_8, %c0_9] : memref<16x32xf32, #tpu.memory_space<vmem>>, vector<16x32xf32>
      %cst_10 = arith.constant dense<0.000000e+00> : vector<16xf32>
      %11 = vector.multi_reduction <add>, %10, %cst_10 [1] : vector<16x32xf32> to vector<16xf32>
      %12 = vector.shape_cast %11 : vector<16xf32> to vector<16x1xf32>
      %cst_11 = arith.constant 3.200000e+01 : f32
      %13 = vector.broadcast %cst_11 : f32 to vector<16x1xf32>
      %14 = arith.divf %12, %13 : vector<16x1xf32>
      %15 = arith.mulf %10, %10 : vector<16x32xf32>
      %cst_12 = arith.constant dense<0.000000e+00> : vector<16xf32>
      %16 = vector.multi_reduction <add>, %15, %cst_12 [1] : vector<16x32xf32> to vector<16xf32>
      %17 = vector.shape_cast %16 : vector<16xf32> to vector<16x1xf32>
      %cst_13 = arith.constant 3.200000e+01 : f32
      %18 = vector.broadcast %cst_13 : f32 to vector<16x1xf32>
      %19 = arith.divf %17, %18 : vector<16x1xf32>
      %20 = arith.mulf %14, %14 : vector<16x1xf32>
      %21 = arith.subf %19, %20 : vector<16x1xf32>
      %cst_14 = arith.constant 9.99999974E-6 : f32
      %22 = vector.broadcast %cst_14 : f32 to vector<16x1xf32>
      %23 = arith.addf %21, %22 : vector<16x1xf32>
      %24 = math.rsqrt %23 : vector<16x1xf32>
      %25 = vector.broadcast %14 : vector<16x1xf32> to vector<16x32xf32>
      %26 = arith.subf %10, %25 : vector<16x32xf32>
      %27 = vector.broadcast %24 : vector<16x1xf32> to vector<16x32xf32>
      %28 = arith.mulf %26, %27 : vector<16x32xf32>
      %c0_15 = arith.constant 0 : index
      %c0_16 = arith.constant 0 : index
      %29 = vector.load %arg3[%c0_15, %c0_16] : memref<1x32xf32, #tpu.memory_space<vmem>>, vector<1x32xf32>
      %30 = vector.broadcast %29 : vector<1x32xf32> to vector<16x32xf32>
      %31 = arith.mulf %28, %30 : vector<16x32xf32>
      %c0_17 = arith.constant 0 : index
      %c0_18 = arith.constant 0 : index
      %32 = vector.load %arg4[%c0_17, %c0_18] : memref<1x32xf32, #tpu.memory_space<vmem>>, vector<1x32xf32>
      %33 = vector.broadcast %32 : vector<1x32xf32> to vector<16x32xf32>
      %34 = arith.addf %31, %33 : vector<16x32xf32>
      %35 = arith.truncf %34 : vector<16x32xf32> to vector<16x32xbf16>
      %c0_19 = arith.constant 0 : index
      %c0_20 = arith.constant 0 : index
      %36 = vector.load %arg8[%c0_19, %c0_20] : memref<16x32xbf16, #tpu.memory_space<vmem>>, vector<16x32xbf16>
      tpu.vector_store %arg8[%c0_19, %c0_20], %35 {strides = array<i32>} : memref<16x32xbf16, #tpu.memory_space<vmem>>, vector<16x32xbf16>,
    } else {
    }
    %c0 = arith.constant 0 : index
    %c0_1 = arith.constant 0 : index
    %3 = vector.load %arg8[%c0, %c0_1] : memref<16x32xbf16, #tpu.memory_space<vmem>>, vector<16x32xbf16>
    %c0_2 = arith.constant 0 : index
    %c0_3 = arith.constant 0 : index
    %4 = vector.load %arg5[%c0_2, %c0_3] : memref<32x128xbf16, #tpu.memory_space<vmem>>, vector<32x128xbf16>
    %cst = arith.constant dense<0.000000e+00> : vector<16x128xf32>
    %5 = tpu.matmul %3, %4, %cst {dimension_numbers = #tpu.dot_dimension_numbers<[1], [0], [0], [1], [0, 0, 1, 1], [], []>} : vector<16x32xbf16>, vector<32x128xbf16>, vector<16x128xf32> -> vector<16x128xf32>
    %c0_4 = arith.constant 0 : index
    %c0_5 = arith.constant 0 : index
    %6 = vector.load %arg6[%c0_4, %c0_5] : memref<1x128xf32, #tpu.memory_space<vmem>>, vector<1x128xf32>
    %7 = vector.broadcast %6 : vector<1x128xf32> to vector<16x128xf32>
    %8 = arith.addf %5, %7 : vector<16x128xf32>
    %c0_6 = arith.constant 0 : index
    %c0_7 = arith.constant 0 : index
    %9 = vector.load %arg7[%c0_6, %c0_7] : memref<16x128xf32, #tpu.memory_space<vmem>>, vector<16x128xf32>
    tpu.vector_store %arg7[%c0_6, %c0_7], %8 {strides = array<i32>} : memref<16x128xf32, #tpu.memory_space<vmem>>, vector<16x128xf32>,
    return
  }
  func.func @transform_0(%arg0: i32, %arg1: i32) -> (i32, i32) {
    %c0_i32 = arith.constant 0 : i32
    %c0_i32_0 = arith.constant 0 : i32
    return %arg0, %c0_i32 : i32, i32
  }
  func.func @transform_1(%arg0: i32, %arg1: i32) -> (i32, i32) {
    %c0_i32 = arith.constant 0 : i32
    %c0_i32_0 = arith.constant 0 : i32
    %c0_i32_1 = arith.constant 0 : i32
    return %c0_i32, %c0_i32_0 : i32, i32
  }
  func.func @transform_2(%arg0: i32, %arg1: i32) -> (i32, i32) {
    %c0_i32 = arith.constant 0 : i32
    %c0_i32_0 = arith.constant 0 : i32
    %c0_i32_1 = arith.constant 0 : i32
    return %c0_i32, %c0_i32_0 : i32, i32
  }
  func.func @transform_3(%arg0: i32, %arg1: i32) -> (i32, i32) {
    %c0_i32 = arith.constant 0 : i32
    %c0_i32_0 = arith.constant 0 : i32
    return %c0_i32, %arg1 : i32, i32
  }
  func.func @transform_4(%arg0: i32, %arg1: i32) -> (i32, i32) {
    %c0_i32 = arith.constant 0 : i32
    %c0_i32_0 = arith.constant 0 : i32
    return %c0_i32, %arg1 : i32, i32
  }
  func.func @transform_5(%arg0: i32, %arg1: i32) -> (i32, i32) {
    %c0_i32 = arith.constant 0 : i32
    return %arg0, %arg1 : i32, i32
  }
}

</mosaic_0001>

<bundles_post_ra>
// kernel: tpu_custom_call.1
= control target key start
LH: loop header
LB: loop body
LE: loop exit
PB: predicated region body
PF: predicated region fallthrough
CT: control target
= control target key end

     0   :  { %10 = vsyncpa [#allocation4], 0  ;;  %s384_s0 = inlined_call_operand.hbm [shape: f32[16,32], index: 0, kind: input, shape index: {}]   ;;  %s385_s1 = inlined_call_operand.vmem [shape: f32[1,32], index: 1, kind: input, shape index: {}]   ;;  %s386_s2 = inlined_call_operand.vmem [shape: f32[1,32], index: 2, kind: input, shape index: {}]   ;;  %s387_s3 = inlined_call_operand.hbm [shape: bf16[32,128], index: 3, kind: input, shape index: {}]   ;;  %s388_s4 = inlined_call_operand.vmem [shape: f32[1,128], index: 4, kind: input, shape index: {}]   ;;  %s389_s5 = inlined_call_operand.hbm [shape: f32[16,128], index: 5, kind: output, shape index: {}]  }
   0x1   :  { %11 = vsyncpa [#allocation7], 0 }
   0x2   :  { %12 = vsyncpa [#allocation5], 0  ;;  %s316_s18 = smov [#allocation3]  }
   0x3   :  { %s18_s19 = sshll.u32 %s316_s18, 4  ;;  %s19_s19 = int_to_ptr.vmem [resolvable:$true] %s18_s19 }
   0x4   :  { %s258_s20 = scalar_lea.vmem %s19_s19, 256  ;;  %p263_p1 = scmp.lt.s32.totalorder %s19_s19, %s19_s19 }
   0x5   :  { %p259_p0 = scmp.ne.s32.totalorder %s19_s19, %s258_s20  ;;  %p264_p2 = scmp.lt.s32.totalorder %s258_s20, %s258_s20 }
   0x7   :  { %p265_p3 = por %p264_p2, %p263_p1 }
   0x9   :  { %p266_p4 = pnand %p265_p3, %p259_p0 }
   0xb   :  { %269 = shalt.err (!%p266_p4)
}
   0xc   :  { %s317_s21 = smov 128   ;;  %s318_s22 = smov 8  }
   0xd   :  { %24 = dma.hbm_to_vmem [thread:$0]  %s384_s0, 256, %s19_s19, [#allocation4], %s317_s21, %s317_s21, %s318_s22  }
   0xe   :  { %s319_s25 = smov [#allocation6]  }
   0xf   :  { %s34_s26 = sshll.u32 %s319_s25, 4  ;;  %s35_s26 = int_to_ptr.vmem [resolvable:$true] %s34_s26 }
  0x10   :  { %s278_s27 = scalar_lea.vmem %s35_s26, 256  ;;  %p283_p6 = scmp.lt.s32.totalorder %s35_s26, %s35_s26 }
  0x11   :  { %p279_p5 = scmp.ne.s32.totalorder %s35_s26, %s278_s27  ;;  %p284_p7 = scmp.lt.s32.totalorder %s278_s27, %s278_s27 }
  0x13   :  { %p285_p8 = por %p284_p7, %p283_p6 }
  0x15   :  { %p286_p9 = pnand %p285_p8, %p279_p5 }
  0x17   :  { %289 = shalt.err (!%p286_p9)
}
  0x18   :  { %s320_s28 = smov 64   ;;  %s321_s29 = smov 4  }
  0x19   :  { %40 = dma.hbm_to_vmem [thread:$0]  %s387_s3, 256, %s35_s26, [#allocation7], %s320_s28, %s320_s28, %s321_s29  }
  0x1a   :  { %310 = dma.done.wait [#allocation4], 256  }
  0x1b   :  { %311 = vsyncadd [#allocation4], 4294967040 }
  0x1c   :  { %312 = dma.done.wait [#allocation7], 256  }
  0x1d   :  { %313 = vsyncadd [#allocation7], 4294967040  ;;  %vm56_vm0 = vcmask 261120   ;;  %v54_v0 = vld [vmem:[#allocation3] sm:$0xff]  ;;  %v55_v1 = vld [vmem:[#allocation3 + $0x8] sm:$0xff]  ;;  %v322_v9 = vmov 0.0  }
  0x1e   :  { %v57_v2 = vsel %vm56_vm0, %v54_v0, 0.0  ;;  %v66_v3 = vmul.f32 %v54_v0, %v54_v0  ;;  %v67_v4 = vmul.f32 %v55_v1, %v55_v1  ;;  %v60_v6 = vsel %vm56_vm0, %v55_v1, 0.0  ;;  %v243_v8 = vld [vmem:[#allocation6 + $0x8] sm:$0xff]   ;;  %226 = vmatprep.subr.bf16.mxu0 %v322_v9  ;;  %v244_v10 = vld [vmem:[#allocation6] sm:$0xff]  }
  0x1f   :  { %58 = vadd.xlane.f32.xlu0 %v57_v2  ;;  %vm323_vm1 = vmmov 0   ;;  %227 = vmatpush3.bf16.msra.mxu0 %v243_v8  ;;  %v212_v27 = vld [vmem:[%s385_s1] ss:$0 sm:$0xff]  ;;  %vm114_vm2 = vcmask 257024  }
  0x20   :  { %v68_v5 = vsel %vm56_vm0, %v66_v3, 0.0  ;;  %v71_v7 = vsel %vm56_vm0, %v67_v4, 0.0  ;;  %230 = vmatprep.mubr.msk.bf16.mxu0 %vm323_vm1, %v322_v9  ;;  %228 = vmatprep.subr.bf16.mxu0 %v322_v9  ;;  %v213_v29 = vld [vmem:[%s386_s2] ss:$0 sm:$0xff]  ;;  %s324_s2 = smov [#allocation8]  }
  0x21   :  { %69 = vadd.xlane.f32.xlu1 %v68_v5  ;;  %v216_v40 = vld [vmem:[%s388_s4] ss:$0 sm:$0xff]  ;;  %s199_s10 = sshll.u32 %s324_s2, 4  ;;  %s200_s10 = int_to_ptr.vmem [resolvable:$true] %s199_s10 }
  0x22   :  { %s290_s11 = scalar_lea.vmem %s200_s10, 256  ;;  %p295_p11 = scmp.lt.s32.totalorder %s200_s10, %s200_s10 }
  0x23   :  { %61 = vadd.xlane.f32.xlu0 %v60_v6  ;;  %229 = vmatpush3.bf16.msra.mxu0 %v244_v10  ;;  %p291_p10 = scmp.ne.s32.totalorder %s200_s10, %s290_s11  ;;  %p296_p12 = scmp.lt.s32.totalorder %s290_s11, %s290_s11 }
  0x25   :  { %72 = vadd.xlane.f32.xlu1 %v71_v7  ;;  %p297_p13 = por %p296_p12, %p295_p11 }
  0x27   :  { %p298_p0 = pnand %p297_p13, %p291_p10 }
  0xa8   :  { %v59_v11 = vpop.xlane.xlu0 %58 }
  0xa9   :  { %v64_v12 = vmul.f32 0.03125, %v59_v11 }
  0xaa   :  { %v70_v13 = vpop.xlane.xlu1 %69 }
  0xab   :  { %v76_v14 = vmul.f32 %v64_v12, %v64_v12  ;;  %v74_v15 = vmul.f32 0.03125, %v70_v13  ;;  %v84_v25 = vsub.f32 %v54_v0, %v64_v12 }
  0xac   :  { %v62_v16 = vpop.xlane.xlu0 %61 }
  0xad   :  { %v78_v17 = vsub.f32 %v74_v15, %v76_v14  ;;  %v65_v18 = vmul.f32 0.03125, %v62_v16 }
  0xae   :  { %v73_v19 = vpop.xlane.xlu1 %72 }
  0xaf   :  { %v80_v20 = vadd.f32 1e-05, %v78_v17  ;;  %v77_v21 = vmul.f32 %v65_v18, %v65_v18  ;;  %v75_v22 = vmul.f32 0.03125, %v73_v19  ;;  %v85_v31 = vsub.f32 %v55_v1, %v65_v18 }
  0xb1   :  { %246 = vrsqrt.f32 %v80_v20  ;;  %v79_v23 = vsub.f32 %v75_v22, %v77_v21 }
  0xb3   :  { %v81_v24 = vadd.f32 1e-05, %v79_v23 }
  0xb5   :  { %248 = vrsqrt.f32 %v81_v24 }
  0xbe   :  { %v247_v26 = vpop.eup %246 }
  0xbf   :  { %v86_v28 = vmul.f32 %v247_v26, %v84_v25 }
  0xc1   :  { %v95_v30 = vmul.f32 %v212_v27, %v86_v28 }
  0xc2   :  { %v249_v32 = vpop.eup %248 }
  0xc3   :  { %v104_v33 = vadd.f32 %v213_v29, %v95_v30  ;;  %v87_v34 = vmul.f32 %v249_v32, %v85_v31 }
  0xc5   :  { %v221_v35 = vpack.c.bf16 %v104_v33, %v104_v33  ;;  %v96_v36 = vmul.f32 %v212_v27, %v87_v34 }
  0xc7   :  { %115 = vst.msk [vmem:[#allocation2] sm:$0xf] %vm114_vm2, %v221_v35  ;;  %v105_v37 = vadd.f32 %v213_v29, %v96_v36 }
  0xc9   :  { %v222_v38 = vpack.c.bf16 %v105_v37, %v105_v37 }
  0xcb   :  { %116 = vst.msk [vmem:[#allocation2 + $0x4] sm:$0xf] %vm114_vm2, %v222_v38 }
  0xd2   :  { %v245_v39 = vld [vmem:[#allocation2] sm:$0xff]  }
  0xd3   :  { %231 = vmatmul.mubr.msk.bf16.vlgmr.msra.gmra.mxu0 %vm56_vm0, %v245_v39 }
 0x193   :  { %v185_v41 = vpop.f32.mrf.mxu0 }
 0x194   :  { %v186_v42 = vadd.f32 %v216_v40, %v185_v41 }
 0x195   :  { %v232_v43 = vpop.f32.mrf.mxu0 }
 0x196   :  { %192 = vst [vmem:[#allocation8] sm:$0xff] %v186_v42 }
 0x197   :  { %v188_v44 = vpop.f32.mrf.mxu0 }
 0x198   :  { %v189_v45 = vadd.f32 %v216_v40, %v188_v44 }
 0x199   :  { %v233_v46 = vpop.f32.mrf.mxu0 }
 0x19a   :  { %193 = vst [vmem:[#allocation8 + $0x8] sm:$0xff] %v189_v45 }
 0x19b   :  { %301 = shalt.err (!%p298_p0)
}
 0x19c   :  { %205 = dma.vmem_to_hbm [thread:$0]  %s200_s10, 256, %s389_s5, [#allocation5], %s317_s21, %s317_s21, %s318_s22  }
 0x19d   :  { %314 = dma.done.wait [#allocation5], 256  }
 0x19e   :  { %315 = vsyncadd [#allocation5], 4294967040 }
 0x19f   :  { %209 = vsyncpa [#allocation4], 1 }
 0x1a0   :  { %210 = vsyncpa [#allocation7], 1 }
 0x1a1   :  { %211 = vsyncpa [#allocation5], 1 }

</bundles_post_ra>
